<compile_context>
chip_gen: v7x
topology: tpu7x:2x2x1
jax: 0.10.0
libtpu: 0.0.40
codegen_flags: <defaults>
</compile_context>

<pallas_src>
import functools

import jax
import jax.numpy as jnp
from jax import lax
from jax.experimental import pallas as pl
from jax.experimental.pallas import tpu as pltpu

_LANES = 128    # lane width
_TM = 4096      # rows per grid block (4096x128 f32 = 2 MiB per input buffer)
_SUB = 64       # rows per inner sub-slice (keeps live vregs ~32)
_UNROLL = 8     # unroll factor for the inner fold loop


def _dice_kernel(x_ref, y_ref, inter_out, sum_out, *, rows_total):
    """Accumulate [sum(x*y), sum(x)+sum(y)] into (8, 128) vector partials."""
    step = pl.program_id(0)
    nblocks = pl.num_programs(0)

    @pl.when(step == 0)
    def _init():
        inter_out[...] = jnp.zeros_like(inter_out)
        sum_out[...] = jnp.zeros_like(sum_out)

    tm = x_ref.shape[0]            # static block height
    rem = rows_total % tm          # static: rows in a ragged last block (0 if none)

    def accumulate(row0, nrows):
        # Unmasked fold of `nrows` (static) rows starting at row0 (static or
        # dynamic). Rows past the logical array end are never loaded.
        xs = x_ref[pl.ds(row0, nrows), :].astype(jnp.float32)
        ys = y_ref[pl.ds(row0, nrows), :].astype(jnp.float32)
        prod = xs * ys
        both = xs + ys
        if nrows % 8 == 0:
            # Pure VPU: fold groups of 8 sublanes onto the (8, 128) accumulator.
            inter_out[...] += prod.reshape(nrows // 8, 8, _LANES).sum(axis=0)
            sum_out[...] += both.reshape(nrows // 8, 8, _LANES).sum(axis=0)
        else:
            # Only reachable once (tail of a single-block small input).
            inter_out[0:1, :] += jnp.sum(prod, axis=0, keepdims=True)
            sum_out[0:1, :] += jnp.sum(both, axis=0, keepdims=True)

    def fold_rows(nrows_valid):
        # Fold the first `nrows_valid` (static) rows of the current block.
        n_sub = nrows_valid // _SUB
        tail = nrows_valid - n_sub * _SUB
        if n_sub > 0:
            def body(j, carry):
                accumulate(pl.multiple_of(j * _SUB, _SUB), _SUB)
                return carry

            lax.fori_loop(0, n_sub, body, 0, unroll=_UNROLL)
        if tail > 0:
            accumulate(n_sub * _SUB, tail)

    if rem == 0:
        # All blocks are full — single unmasked path.
        fold_rows(tm)
    else:
        last = nblocks - 1

        @pl.when(step < last)
        def _full_blocks():
            fold_rows(tm)

        @pl.when(step == last)
        def _last_block():
            # Statically-known valid row count; no masking needed.
            fold_rows(rem)


def dice_loss(inputs, targets, smooth=1.0):
    """Pallas equivalent of DiceLoss.forward(inputs, targets)."""
    x = jnp.reshape(inputs, (-1,))
    y = jnp.reshape(targets, (-1,))
    n = x.shape[0]

    rows = n // _LANES
    n_main = rows * _LANES

    if rows == 0:
        # Tiny (or empty) input: plain JAX. Also guards the empty-grid case.
        xf = x.astype(jnp.float32)
        yf = y.astype(jnp.float32)
        inter = jnp.sum(xf * yf)
        total = jnp.sum(xf) + jnp.sum(yf)
    else:
        # NOTE: when n is not a multiple of 128 the prefix slice materializes a
        # copy; for typical segmentation shapes n % 128 == 0 and this is free.
        xm = x if n_main == n else x[:n_main]
        ym = y if n_main == n else y[:n_main]
        x2 = xm.reshape(rows, _LANES)
        y2 = ym.reshape(rows, _LANES)

        tm = min(_TM, rows)                  # small inputs: one full-array block
        nblocks = pl.cdiv(rows, tm)

        kernel = functools.partial(_dice_kernel, rows_total=rows)
        inter_p, sum_p = pl.pallas_call(
            kernel,
            out_shape=(
                jax.ShapeDtypeStruct((8, _LANES), jnp.float32),
                jax.ShapeDtypeStruct((8, _LANES), jnp.float32),
            ),
            grid_spec=pltpu.PrefetchScalarGridSpec(
                num_scalar_prefetch=0,
                grid=(nblocks,),
                in_specs=[
                    pl.BlockSpec((tm, _LANES), lambda i: (i, 0)),
                    pl.BlockSpec((tm, _LANES), lambda i: (i, 0)),
                ],
                out_specs=(
                    pl.BlockSpec((8, _LANES), lambda i: (0, 0)),
                    pl.BlockSpec((8, _LANES), lambda i: (0, 0)),
                ),
            ),
            compiler_params=pltpu.CompilerParams(
                dimension_semantics=("arbitrary",),
                vmem_limit_bytes=32 * 1024 * 1024,
            ),
        )(x2, y2)

        inter = jnp.sum(inter_p)
        total = jnp.sum(sum_p)

        if n_main < n:
            # Flat tail of < 128 elements that cannot form a 128-lane row.
            xt = x[n_main:].astype(jnp.float32)
            yt = y[n_main:].astype(jnp.float32)
            inter = inter + jnp.sum(xt * yt)
            total = total + jnp.sum(xt) + jnp.sum(yt)

    smooth = jnp.float32(smooth)
    dice = (2.0 * inter + smooth) / (total + smooth)
    return jnp.float32(1.0) - dice


def _dice_loss_ref(inputs, targets, smooth=1.0):
    x = jnp.reshape(inputs, (-1,)).astype(jnp.float32)
    y = jnp.reshape(targets, (-1,)).astype(jnp.float32)
    inter = jnp.sum(x * y)
    dice = (2.0 * inter + smooth) / (jnp.sum(x) + jnp.sum(y) + smooth)
    return 1.0 - dice


def _check(inputs, targets, smooth=1.0):
    loss = jax.block_until_ready(dice_loss(inputs, targets, smooth=smooth))
    ref = jax.block_until_ready(_dice_loss_ref(inputs, targets, smooth=smooth))
    assert jnp.allclose(loss, ref, rtol=1e-4, atol=1e-5), (loss, ref)


if __name__ == "__main__":
    key = jax.random.PRNGKey(0)
    k1, k2, k3, k4, k5, k6, k7, k8 = jax.random.split(key, 8)

    # 1) Small NCHW case like the PyTorch module's typical segmentation inputs
    #    (single full-array block path).
    inputs = jax.nn.sigmoid(jax.random.normal(k1, (2, 4, 16, 16), jnp.float32))
    targets = (jax.random.uniform(k2, (2, 4, 16, 16)) > 0.5).astype(jnp.float32)
    _check(inputs, targets, smooth=1.0)

    # 2) bf16 predictions streamed without upcasting in HBM; n % 128 == 0.
    inputs2 = jax.nn.sigmoid(
        jax.random.normal(k3, (1, 2, 600, 128), jnp.float32)
    ).astype(jnp.bfloat16)
    targets2 = (jax.random.uniform(k4, (1, 2, 600, 128)) > 0.5).astype(
        jnp.float32)
    _check(inputs2, targets2, smooth=1.0)

    # 3) Awkward size: non-multiple-of-128 flat length and non-multiple-of-8
    #    row count (in-kernel odd-row fold + plain-JAX flat tail).
    inputs3 = jax.nn.sigmoid(jax.random.normal(k5, (2, 3, 37, 129), jnp.float32))
    targets3 = (jax.random.uniform(k6, (2, 3, 37, 129)) > 0.5).astype(
        jnp.float32)
    _check(inputs3, targets3, smooth=1.0)

    # 4) Multi-block streaming path with a ragged (statically folded) last
    #    block; both streams in bf16 to exercise narrow-dtype bandwidth path.
    inputs4 = jax.nn.sigmoid(
        jax.random.normal(k7, (1, 1, 4800, 128), jnp.float32)
    ).astype(jnp.bfloat16)
    targets4 = (jax.random.uniform(k8, (1, 1, 4800, 128)) > 0.5).astype(
        jnp.bfloat16)
    _check(inputs4, targets4, smooth=1.0)

    print("KERNEL_OK")
</pallas_src>

<mosaic_0001>
module attributes {stable_mosaic.version = 11 : i64} {
  func.func @_dice_kernel(%arg0: i32, %arg1: memref<16x128xf32, #tpu.memory_space<vmem>>, %arg2: memref<16x128xf32, #tpu.memory_space<vmem>>, %arg3: memref<8x128xf32, #tpu.memory_space<vmem>>, %arg4: memref<8x128xf32, #tpu.memory_space<vmem>>) attributes {dimension_semantics = [#tpu.dimension_semantics<arbitrary>], iteration_bounds = array<i64: 1>, scalar_prefetch = 0 : i64, scratch_operands = 0 : i64, tpu.core_type = #tpu.core_type<tc>, window_params = [{transform_indices = @transform_0, window_bounds = array<i64: 16, 128>}, {transform_indices = @transform_1, window_bounds = array<i64: 16, 128>}, {pipeline_mode = #tpu.pipeline_mode<synchronous>, transform_indices = @transform_2, window_bounds = array<i64: 8, 128>}, {pipeline_mode = #tpu.pipeline_mode<synchronous>, transform_indices = @transform_3, window_bounds = array<i64: 8, 128>}]} {
    %c0_i32 = arith.constant 0 : i32
    %0 = arith.cmpi eq, %arg0, %c0_i32 : i32
    %1 = arith.extui %0 : i1 to i32
    %c0_i32_0 = arith.constant 0 : i32
    %2 = arith.cmpi ne, %1, %c0_i32_0 : i32
    scf.if %2 {
      %cst_13 = arith.constant 0.000000e+00 : f32
      %17 = vector.broadcast %cst_13 : f32 to vector<8x128xf32>
      %c0_14 = arith.constant 0 : index
      %c0_15 = arith.constant 0 : index
      %18 = vector.load %arg3[%c0_14, %c0_15] : memref<8x128xf32, #tpu.memory_space<vmem>>, vector<8x128xf32>
      tpu.vector_store %arg3[%c0_14, %c0_15], %17 {strides = array<i32>} : memref<8x128xf32, #tpu.memory_space<vmem>>, vector<8x128xf32>,
      %cst_16 = arith.constant 0.000000e+00 : f32
      %19 = vector.broadcast %cst_16 : f32 to vector<8x128xf32>
      %c0_17 = arith.constant 0 : index
      %c0_18 = arith.constant 0 : index
      %20 = vector.load %arg4[%c0_17, %c0_18] : memref<8x128xf32, #tpu.memory_space<vmem>>, vector<8x128xf32>
      tpu.vector_store %arg4[%c0_17, %c0_18], %19 {strides = array<i32>} : memref<8x128xf32, #tpu.memory_space<vmem>>, vector<8x128xf32>,
    } else {
    }
    %c0 = arith.constant 0 : index
    %c0_1 = arith.constant 0 : index
    %3 = vector.load %arg1[%c0, %c0_1] : memref<16x128xf32, #tpu.memory_space<vmem>>, vector<16x128xf32>
    %c0_2 = arith.constant 0 : index
    %c0_3 = arith.constant 0 : index
    %4 = vector.load %arg2[%c0_2, %c0_3] : memref<16x128xf32, #tpu.memory_space<vmem>>, vector<16x128xf32>
    %5 = arith.mulf %3, %4 : vector<16x128xf32>
    %6 = arith.addf %3, %4 : vector<16x128xf32>
    %c0_4 = arith.constant 0 : index
    %c0_5 = arith.constant 0 : index
    %7 = vector.load %arg3[%c0_4, %c0_5] : memref<8x128xf32, #tpu.memory_space<vmem>>, vector<8x128xf32>
    %8 = vector.shape_cast %5 : vector<16x128xf32> to vector<2x8x128xf32>
    %cst = arith.constant dense<0.000000e+00> : vector<8x128xf32>
    %9 = vector.multi_reduction <add>, %8, %cst [0] : vector<2x8x128xf32> to vector<8x128xf32>
    %10 = arith.addf %7, %9 : vector<8x128xf32>
    %c0_6 = arith.constant 0 : index
    %c0_7 = arith.constant 0 : index
    %11 = vector.load %arg3[%c0_6, %c0_7] : memref<8x128xf32, #tpu.memory_space<vmem>>, vector<8x128xf32>
    tpu.vector_store %arg3[%c0_6, %c0_7], %10 {strides = array<i32>} : memref<8x128xf32, #tpu.memory_space<vmem>>, vector<8x128xf32>,
    %c0_8 = arith.constant 0 : index
    %c0_9 = arith.constant 0 : index
    %12 = vector.load %arg4[%c0_8, %c0_9] : memref<8x128xf32, #tpu.memory_space<vmem>>, vector<8x128xf32>
    %13 = vector.shape_cast %6 : vector<16x128xf32> to vector<2x8x128xf32>
    %cst_10 = arith.constant dense<0.000000e+00> : vector<8x128xf32>
    %14 = vector.multi_reduction <add>, %13, %cst_10 [0] : vector<2x8x128xf32> to vector<8x128xf32>
    %15 = arith.addf %12, %14 : vector<8x128xf32>
    %c0_11 = arith.constant 0 : index
    %c0_12 = arith.constant 0 : index
    %16 = vector.load %arg4[%c0_11, %c0_12] : memref<8x128xf32, #tpu.memory_space<vmem>>, vector<8x128xf32>
    tpu.vector_store %arg4[%c0_11, %c0_12], %15 {strides = array<i32>} : memref<8x128xf32, #tpu.memory_space<vmem>>, vector<8x128xf32>,
    return
  }
  func.func @transform_0(%arg0: i32) -> (i32, i32) {
    %c0_i32 = arith.constant 0 : i32
    %c0_i32_0 = arith.constant 0 : i32
    return %arg0, %c0_i32 : i32, i32
  }
  func.func @transform_1(%arg0: i32) -> (i32, i32) {
    %c0_i32 = arith.constant 0 : i32
    %c0_i32_0 = arith.constant 0 : i32
    return %arg0, %c0_i32 : i32, i32
  }
  func.func @transform_2(%arg0: i32) -> (i32, i32) {
    %c0_i32 = arith.constant 0 : i32
    %c0_i32_0 = arith.constant 0 : i32
    %c0_i32_1 = arith.constant 0 : i32
    return %c0_i32, %c0_i32_0 : i32, i32
  }
  func.func @transform_3(%arg0: i32) -> (i32, i32) {
    %c0_i32 = arith.constant 0 : i32
    %c0_i32_0 = arith.constant 0 : i32
    %c0_i32_1 = arith.constant 0 : i32
    return %c0_i32, %c0_i32_0 : i32, i32
  }
}

</mosaic_0001>

<bundles_post_ra>
// kernel: tpu_custom_call.1
= control target key start
LH: loop header
LB: loop body
LE: loop exit
PB: predicated region body
PF: predicated region fallthrough
CT: control target
= control target key end

     0   :  { %9 = vsyncpa [#allocation3], 0  ;;  %s272_s0 = inlined_call_operand.hbm [shape: f32[16,128], index: 0, kind: input, shape index: {}]   ;;  %s273_s1 = inlined_call_operand.hbm [shape: f32[16,128], index: 1, kind: input, shape index: {}]   ;;  %s274_s2 = inlined_call_operand.hbm [shape: f32[8,128], index: 2, kind: output, shape index: {0}]   ;;  %s275_s3 = inlined_call_operand.hbm [shape: f32[8,128], index: 3, kind: output, shape index: {1}]  }
   0x1   :  { %10 = vsyncpa [#allocation6], 0 }
   0x2   :  { %11 = vsyncpa [#allocation4], 0 }
   0x3   :  { %12 = vsyncpa [#allocation9], 0  ;;  %s198_s12 = smov [#allocation2]   ;;  %s102_s16 = scalar_lea.hbm %s272_s0, 256 }
   0x4   :  { %s18_s13 = sshll.u32 %s198_s12, 4  ;;  %p103_p0 = scmp.ne.s32.totalorder %s272_s0, %s102_s16  ;;  %s19_s13 = int_to_ptr.vmem [resolvable:$true] %s18_s13 }
   0x5   :  { %p106_p1 = scmp.lt.u32.totalorder %s102_s16, %s272_s0 }
   0x7   :  { %p108_p2 = pnand %p106_p1, %p103_p0 }
   0x9   :  { %111 = shalt.err (!%p108_p2)
}
   0xa   :  { %s112_s21 = scalar_lea.vmem %s19_s13, 256  ;;  %p117_p4 = scmp.lt.s32.totalorder %s19_s13, %s19_s13 }
   0xb   :  { %p113_p3 = scmp.ne.s32.totalorder %s19_s13, %s112_s21  ;;  %p118_p5 = scmp.lt.s32.totalorder %s112_s21, %s112_s21 }
   0xd   :  { %p119_p6 = por %p118_p5, %p117_p4 }
   0xf   :  { %p120_p7 = pnand %p119_p6, %p113_p3 }
  0x11   :  { %123 = shalt.err (!%p120_p7)
}
  0x12   :  { %s199_s22 = smov 128   ;;  %s200_s23 = smov 8  }
  0x13   :  { %24 = dma.hbm_to_vmem [thread:$0]  %s272_s0, 256, %s19_s13, [#allocation3], %s199_s22, %s199_s22, %s200_s23  }
  0x14   :  { %s201_s26 = smov [#allocation5]   ;;  %s124_s30 = scalar_lea.hbm %s273_s1, 256 }
  0x15   :  { %s30_s27 = sshll.u32 %s201_s26, 4  ;;  %p125_p8 = scmp.ne.s32.totalorder %s273_s1, %s124_s30  ;;  %s31_s27 = int_to_ptr.vmem [resolvable:$true] %s30_s27 }
  0x16   :  { %p128_p9 = scmp.lt.u32.totalorder %s124_s30, %s273_s1 }
  0x18   :  { %p130_p10 = pnand %p128_p9, %p125_p8 }
  0x1a   :  { %133 = shalt.err (!%p130_p10)
}
  0x1b   :  { %s134_s8 = scalar_lea.vmem %s31_s27, 256  ;;  %p139_p12 = scmp.lt.s32.totalorder %s31_s27, %s31_s27 }
  0x1c   :  { %p135_p11 = scmp.ne.s32.totalorder %s31_s27, %s134_s8  ;;  %p140_p13 = scmp.lt.s32.totalorder %s134_s8, %s134_s8 }
  0x1e   :  { %p141_p0 = por %p140_p13, %p139_p12 }
  0x20   :  { %p142_p1 = pnand %p141_p0, %p135_p11 }
  0x22   :  { %145 = shalt.err (!%p142_p1)
}
  0x23   :  { %36 = dma.hbm_to_vmem [thread:$0]  %s273_s1, 256, %s31_s27, [#allocation6], %s199_s22, %s199_s22, %s200_s23  }
  0x24   :  { %190 = dma.done.wait [#allocation3], 256  }
  0x25   :  { %191 = vsyncadd [#allocation3], 4294967040 }
  0x26   :  { %192 = dma.done.wait [#allocation6], 256  }
  0x27   :  { %193 = vsyncadd [#allocation6], 4294967040  ;;  %v49_v0 = vld [vmem:[#allocation2] sm:$0xff]  ;;  %v50_v1 = vld [vmem:[#allocation2 + $0x8] sm:$0xff]  ;;  %s202_s10 = smov [#allocation7]   ;;  %s203_s12 = smov [#allocation8]  }
  0x28   :  { %v51_v2 = vld [vmem:[#allocation5] sm:$0xff]  ;;  %v52_v3 = vld [vmem:[#allocation5 + $0x8] sm:$0xff]  ;;  %s71_s11 = sshll.u32 %s202_s10, 4  ;;  %s81_s13 = sshll.u32 %s203_s12, 4  ;;  %s72_s11 = int_to_ptr.vmem [resolvable:$true] %s71_s11  ;;  %s82_s13 = int_to_ptr.vmem [resolvable:$true] %s81_s13 }
  0x29   :  { %v53_v4 = vmul.f32 %v51_v2, %v49_v0  ;;  %v55_v5 = vadd.f32 %v51_v2, %v49_v0  ;;  %v54_v6 = vmul.f32 %v52_v3, %v50_v1  ;;  %v56_v7 = vadd.f32 %v52_v3, %v50_v1  ;;  %s146_s1 = scalar_lea.vmem %s72_s11, 128  ;;  %p151_p3 = scmp.lt.s32.totalorder %s72_s11, %s72_s11 }
  0x2a   :  { %p147_p2 = scmp.ne.s32.totalorder %s72_s11, %s146_s1  ;;  %p152_p4 = scmp.lt.s32.totalorder %s146_s1, %s146_s1 }
  0x2b   :  { %v58_v8 = vadd.f32 %v54_v6, %v53_v4  ;;  %v62_v9 = vadd.f32 %v56_v7, %v55_v5 }
  0x2c   :  { %p153_p5 = por %p152_p4, %p151_p3 }
  0x2d   :  { %60 = vst [vmem:[#allocation7] sm:$0xff] %v58_v8  ;;  %64 = vst [vmem:[#allocation8] sm:$0xff] %v62_v9 }
  0x2e   :  { %p154_p6 = pnand %p153_p5, %p147_p2 }
  0x30   :  { %157 = shalt.err (!%p154_p6)
}
  0x31   :  { %s158_s16 = scalar_lea.hbm %s274_s2, 128 }
  0x32   :  { %p159_p7 = scmp.ne.s32.totalorder %s274_s2, %s158_s16  ;;  %p162_p8 = scmp.lt.u32.totalorder %s158_s16, %s274_s2 }
  0x34   :  { %p164_p9 = pnand %p162_p8, %p159_p7 }
  0x36   :  { %167 = shalt.err (!%p164_p9)
}
  0x37   :  { %74 = dma.vmem_to_hbm [thread:$0]  %s72_s11, 128, %s274_s2, [#allocation4]  }
  0x38   :  { %s168_s23 = scalar_lea.vmem %s82_s13, 128  ;;  %p173_p11 = scmp.lt.s32.totalorder %s82_s13, %s82_s13 }
  0x39   :  { %p169_p10 = scmp.ne.s32.totalorder %s82_s13, %s168_s23  ;;  %p174_p12 = scmp.lt.s32.totalorder %s168_s23, %s168_s23 }
  0x3b   :  { %p175_p13 = por %p174_p12, %p173_p11 }
  0x3d   :  { %p176_p0 = pnand %p175_p13, %p169_p10 }
  0x3f   :  { %179 = shalt.err (!%p176_p0)
}
  0x40   :  { %s180_s26 = scalar_lea.hbm %s275_s3, 128 }
  0x41   :  { %p181_p1 = scmp.ne.s32.totalorder %s275_s3, %s180_s26  ;;  %p184_p2 = scmp.lt.u32.totalorder %s180_s26, %s275_s3 }
  0x43   :  { %p186_p3 = pnand %p184_p2, %p181_p1 }
  0x45   :  { %189 = shalt.err (!%p186_p3)
}
  0x46   :  { %84 = dma.vmem_to_hbm [thread:$0]  %s82_s13, 128, %s275_s3, [#allocation9]  }
  0x47   :  { %194 = dma.done.wait [#allocation4], 128  }
  0x48   :  { %195 = vsyncadd [#allocation4], 4294967168 }
  0x49   :  { %196 = dma.done.wait [#allocation9], 128  }
  0x4a   :  { %197 = vsyncadd [#allocation9], 4294967168 }
  0x4b   :  { %91 = vsyncpa [#allocation3], 1 }
  0x4c   :  { %92 = vsyncpa [#allocation6], 1 }
  0x4d   :  { %93 = vsyncpa [#allocation4], 1 }
  0x4e   :  { %94 = vsyncpa [#allocation9], 1 }

</bundles_post_ra>
